<compile_context>
chip_gen: v7x
topology: tpu7x:2x2x1
jax: 0.10.0
libtpu: 0.0.40
codegen_flags: <defaults>
</compile_context>

<pallas_src>
import functools
import math

import jax
import jax.numpy as jnp
from jax.experimental import pallas as pl
from jax.experimental.pallas import tpu as pltpu


_VMEM_LIMIT = 64 * 1024 * 1024  # explicit scoped-VMEM budget for all kernels


# ---------------------------------------------------------------------------
# tiling helpers
# ---------------------------------------------------------------------------
def _pick_tile(dim, target, multiple=8):
    """Largest divisor of `dim` that is <= target and a multiple of `multiple`.

    Returns `dim` itself when dim <= target (full-extent block is always legal).
    Raises instead of silently falling back to a VMEM-blowing giant block.
    """
    if dim <= target:
        return dim
    start = target - (target % multiple)
    for t in range(start, multiple - 1, -multiple):
        if dim % t == 0:
            return t
    # TODO(synk): add a pad-and-mask path for awkward (prime-ish) sizes.
    raise ValueError(
        f"no tile <= {target} (multiple of {multiple}) divides {dim}; pad input")


def _heads_per_block(num_heads, head_dim, lane_target=128):
    """Pack heads so the last block dim is lane dense (>=128) when possible."""
    if num_heads * head_dim <= lane_target:
        return num_heads                      # tiny model: one group = all heads
    for hpg in range(1, num_heads + 1):
        if num_heads % hpg:
            continue
        gh = hpg * head_dim
        if gh >= lane_target and (gh % 128 == 0 or hpg == num_heads):
            return hpg
    return num_heads


# ---------------------------------------------------------------------------
# Fused QKV projection:  q/k/v = x @ Wq/Wk/Wv + b   (f32 accumulation)
# ---------------------------------------------------------------------------
def _qkv_proj_kernel(x_ref, wq_ref, wk_ref, wv_ref, b_ref,
                     q_ref, k_ref, v_ref):
    x = x_ref[...]
    for row, w_ref, o_ref in ((0, wq_ref, q_ref),
                              (1, wk_ref, k_ref),
                              (2, wv_ref, v_ref)):
        acc = jnp.dot(x, w_ref[...], preferred_element_type=jnp.float32)
        acc = acc + b_ref[row:row + 1, :].astype(jnp.float32)
        o_ref[...] = acc.astype(o_ref.dtype)


def qkv_projection(x, wq, wk, wv, b3, *, tm_target=512, tn_target=512):
    """x: (M, K); wq/wk/wv: (K, H); b3: (3, H)  ->  (q, k, v) each (M, H)."""
    m, kdim = x.shape
    n = wq.shape[1]
    tm = _pick_tile(m, tm_target, 8)
    tn = _pick_tile(n, tn_target, 128)

    w_spec = pl.BlockSpec((kdim, tn), lambda j, i: (0, j))   # const on inner axis
    out_spec = pl.BlockSpec((tm, tn), lambda j, i: (i, j))   # lane-dense stores
    out_sds = jax.ShapeDtypeStruct((m, n), x.dtype)

    return pl.pallas_call(
        _qkv_proj_kernel,
        out_shape=(out_sds, out_sds, out_sds),
        grid_spec=pltpu.PrefetchScalarGridSpec(
            num_scalar_prefetch=0,
            grid=(n // tn, m // tm),          # inner axis = rows -> weights stay put
            in_specs=[
                pl.BlockSpec((tm, kdim), lambda j, i: (i, 0)),
                w_spec, w_spec, w_spec,
                pl.BlockSpec((3, tn), lambda j, i: (0, j)),
            ],
            out_specs=(out_spec, out_spec, out_spec),
        ),
        compiler_params=pltpu.CompilerParams(
            dimension_semantics=("parallel", "parallel"),
            vmem_limit_bytes=_VMEM_LIMIT),
    )(x, wq, wk, wv, b3)


# ---------------------------------------------------------------------------
# Output projection linear:  y = x @ W + b
# ---------------------------------------------------------------------------
def _linear_kernel(x_ref, w_ref, b_ref, o_ref):
    acc = jnp.dot(x_ref[...], w_ref[...], preferred_element_type=jnp.float32)
    acc = acc + b_ref[...].astype(jnp.float32)
    o_ref[...] = acc.astype(o_ref.dtype)


def linear(x, w, b, *, tm_target=512, tn_target=1024):
    """x: (M, K); w: (K, N); b: (1, N) -> (M, N)."""
    m, kdim = x.shape
    n = w.shape[1]
    tm = _pick_tile(m, tm_target, 8)
    tn = _pick_tile(n, tn_target, 128)
    return pl.pallas_call(
        _linear_kernel,
        out_shape=jax.ShapeDtypeStruct((m, n), x.dtype),
        grid_spec=pltpu.PrefetchScalarGridSpec(
            num_scalar_prefetch=0,
            grid=(n // tn, m // tm),
            in_specs=[
                pl.BlockSpec((tm, kdim), lambda j, i: (i, 0)),
                pl.BlockSpec((kdim, tn), lambda j, i: (0, j)),
                pl.BlockSpec((1, tn), lambda j, i: (0, j)),
            ],
            out_specs=pl.BlockSpec((tm, tn), lambda j, i: (i, j)),
        ),
        compiler_params=pltpu.CompilerParams(
            dimension_semantics=("parallel", "parallel"),
            vmem_limit_bytes=_VMEM_LIMIT),
    )(x, w, b)


# ---------------------------------------------------------------------------
# Multi-head SDPA core.  q/k/v/ctx all live in the merged (B, S, nH*dh) layout;
# head split/merge happens purely through BlockSpec column slices.
# ---------------------------------------------------------------------------
def _attn_kernel(q_ref, k_ref, v_ref, o_ref, *, scale, head_dim, heads_per_blk):
    # q_ref/o_ref: (1, tq, gh); k_ref/v_ref: (1, S, gh); gh = heads_per_blk * dh.
    q = q_ref[0] * scale           # fold softmax scale into q (once per step)
    k = k_ref[0]
    v = v_ref[0]

    ctx_heads = []
    for h in range(heads_per_blk):
        lo, hi = h * head_dim, (h + 1) * head_dim
        # scores: (tq, S), f32 accumulation on the MXU
        s = jax.lax.dot_general(q[:, lo:hi], k[:, lo:hi],
                                (((1,), (1,)), ((), ())),
                                preferred_element_type=jnp.float32)
        m = jnp.max(s, axis=-1, keepdims=True)        # full-row softmax (K/V resident)
        p = jnp.exp(s - m)                            # f32 softmax math (v5e: no bf16 VPU)
        l = jnp.sum(p, axis=-1, keepdims=True)
        ctx = jax.lax.dot_general(p.astype(v.dtype), v[:, lo:hi],
                                  (((1,), (0,)), ((), ())),
                                  preferred_element_type=jnp.float32)
        ctx_heads.append(ctx * pl.reciprocal(l, approx=True))

    o_ref[0] = jnp.concatenate(ctx_heads, axis=-1).astype(o_ref.dtype)


def mha_attention(q, k, v, *, num_heads, scale, tq_target=512, lane_target=128):
    """q/k/v: (B, S, H) merged-head layout -> ctx: (B, S, H) merged-head layout."""
    b, s, h = q.shape
    head_dim = h // num_heads
    hpg = _heads_per_block(num_heads, head_dim, lane_target)
    gh = hpg * head_dim
    n_groups = h // gh
    tq = _pick_tile(s, tq_target, 8)

    kernel = functools.partial(_attn_kernel, scale=scale, head_dim=head_dim,
                               heads_per_blk=hpg)
    return pl.pallas_call(
        kernel,
        out_shape=jax.ShapeDtypeStruct((b, s, h), q.dtype),
        grid_spec=pltpu.PrefetchScalarGridSpec(
            num_scalar_prefetch=0,
            grid=(b, n_groups, s // tq),     # q-tile innermost -> K/V block never changes
            in_specs=[
                pl.BlockSpec((1, tq, gh), lambda bb, g, i: (bb, i, g)),
                pl.BlockSpec((1, s, gh), lambda bb, g, i: (bb, 0, g)),   # full-S K
                pl.BlockSpec((1, s, gh), lambda bb, g, i: (bb, 0, g)),   # full-S V
            ],
            out_specs=pl.BlockSpec((1, tq, gh), lambda bb, g, i: (bb, i, g)),
        ),
        compiler_params=pltpu.CompilerParams(
            dimension_semantics=("parallel", "parallel", "parallel"),
            vmem_limit_bytes=_VMEM_LIMIT),
    )(q, k, v)


# ---------------------------------------------------------------------------
# Parameter preparation (done ONCE, outside the per-call forward)
# ---------------------------------------------------------------------------
def prepare_params(params, compute_dtype=None):
    """Transpose PyTorch (out,in) weights and stack the qkv biases once."""
    dt = params["q_w"].dtype if compute_dtype is None else compute_dtype
    return {
        "wq": params["q_w"].T.astype(dt),
        "wk": params["k_w"].T.astype(dt),
        "wv": params["v_w"].T.astype(dt),
        "b3": jnp.stack([params["q_b"], params["k_b"], params["v_b"]]).astype(dt),
        "w_proj": params["proj_w"].T.astype(dt),
        "b_proj": params["proj_b"].reshape(1, -1).astype(dt),
    }


# ---------------------------------------------------------------------------
# Full module forward
# ---------------------------------------------------------------------------
def vjepa_sdpa_self_attention(hidden_states, prepared, *, num_heads,
                              compute_dtype=None):
    """hidden_states: (B, S, H); prepared = prepare_params(...)."""
    b, s, h = hidden_states.shape
    assert h % num_heads == 0
    head_dim = h // num_heads
    dt = hidden_states.dtype if compute_dtype is None else compute_dtype

    x = hidden_states.reshape(b * s, h).astype(dt)           # contiguous: free

    # QKV projection; outputs already in merged (M, H) head layout.
    q2, k2, v2 = qkv_projection(x, prepared["wq"], prepared["wk"],
                                prepared["wv"], prepared["b3"])

    # (M, H) -> (B, S, H) reshapes are free (no data movement, no transpose).
    q = q2.reshape(b, s, h)
    k = k2.reshape(b, s, h)
    v = v2.reshape(b, s, h)

    ctx = mha_attention(q, k, v, num_heads=num_heads,
                        scale=1.0 / math.sqrt(head_dim))      # (B, S, H) merged

    out = linear(ctx.reshape(b * s, h), prepared["w_proj"], prepared["b_proj"])
    return out.reshape(b, s, h).astype(hidden_states.dtype)


# ---------------------------------------------------------------------------
# Pure-JAX reference (mirrors the PyTorch module, eval mode)
# ---------------------------------------------------------------------------
def _ref_attention(hidden_states, params, num_heads):
    b, s, h = hidden_states.shape
    dh = h // num_heads
    q = hidden_states @ params["q_w"].T + params["q_b"]
    k = hidden_states @ params["k_w"].T + params["k_b"]
    v = hidden_states @ params["v_w"].T + params["v_b"]

    def split(t):
        return jnp.transpose(t.reshape(b, s, num_heads, dh), (0, 2, 1, 3))

    q, k, v = split(q), split(k), split(v)
    scores = jnp.einsum("bhqd,bhkd->bhqk", q, k) / math.sqrt(dh)
    probs = jax.nn.softmax(scores, axis=-1)
    ctx = jnp.einsum("bhqk,bhkd->bhqd", probs, v)
    ctx = jnp.transpose(ctx, (0, 2, 1, 3)).reshape(b, s, h)
    return ctx @ params["proj_w"].T + params["proj_b"]


if __name__ == "__main__":
    # Small config consistent with the module: hidden_size=32, 4 heads
    # (head_dim=8), batch=2, seq=8, qkv_bias=True, dropout=0, not causal.
    hidden_size = 32
    num_heads = 4
    batch, seq = 2, 8

    key = jax.random.PRNGKey(0)
    keys = jax.random.split(key, 9)
    init = 0.02

    x = jax.random.normal(keys[0], (batch, seq, hidden_size), jnp.float32)
    params = {
        "q_w": jax.random.normal(keys[1], (hidden_size, hidden_size), jnp.float32) * init,
        "q_b": jax.random.normal(keys[2], (hidden_size,), jnp.float32) * init,
        "k_w": jax.random.normal(keys[3], (hidden_size, hidden_size), jnp.float32) * init,
        "k_b": jax.random.normal(keys[4], (hidden_size,), jnp.float32) * init,
        "v_w": jax.random.normal(keys[5], (hidden_size, hidden_size), jnp.float32) * init,
        "v_b": jax.random.normal(keys[6], (hidden_size,), jnp.float32) * init,
        "proj_w": jax.random.normal(keys[7], (hidden_size, hidden_size), jnp.float32) * init,
        "proj_b": jax.random.normal(keys[8], (hidden_size,), jnp.float32) * init,
    }

    ref = _ref_attention(x, params, num_heads)

    # --- f32 path (tight numerical check) -----------------------------------
    prepared = prepare_params(params)
    out = vjepa_sdpa_self_attention(x, prepared, num_heads=num_heads)
    out = jax.block_until_ready(out)
    assert out.shape == (batch, seq, hidden_size)
    err = float(jnp.max(jnp.abs(out - ref)))
    assert err < 1e-3, f"f32 max abs err {err}"

    # --- bf16 operand path (MXU-native; f32 accumulation & softmax stats) ---
    prepared_bf16 = prepare_params(params, compute_dtype=jnp.bfloat16)
    out_bf16 = vjepa_sdpa_self_attention(x, prepared_bf16, num_heads=num_heads,
                                         compute_dtype=jnp.bfloat16)
    out_bf16 = jax.block_until_ready(out_bf16)
    err_bf16 = float(jnp.max(jnp.abs(out_bf16.astype(jnp.float32) - ref)))
    assert err_bf16 < 1e-2, f"bf16 max abs err {err_bf16}"

    print("KERNEL_OK")
</pallas_src>

<mosaic_0001>
module attributes {stable_mosaic.version = 11 : i64} {
  func.func @_qkv_proj_kernel(%arg0: i32, %arg1: i32, %arg2: memref<16x32xf32, #tpu.memory_space<vmem>>, %arg3: memref<32x32xf32, #tpu.memory_space<vmem>>, %arg4: memref<32x32xf32, #tpu.memory_space<vmem>>, %arg5: memref<32x32xf32, #tpu.memory_space<vmem>>, %arg6: memref<3x32xf32, #tpu.memory_space<vmem>>, %arg7: memref<16x32xf32, #tpu.memory_space<vmem>>, %arg8: memref<16x32xf32, #tpu.memory_space<vmem>>, %arg9: memref<16x32xf32, #tpu.memory_space<vmem>>) attributes {dimension_semantics = [#tpu.dimension_semantics<parallel>, #tpu.dimension_semantics<parallel>], iteration_bounds = array<i64: 1, 1>, scalar_prefetch = 0 : i64, scratch_operands = 0 : i64, tpu.core_type = #tpu.core_type<tc>, window_params = [{transform_indices = @transform_0, window_bounds = array<i64: 16, 32>}, {transform_indices = @transform_1, window_bounds = array<i64: 32, 32>}, {transform_indices = @transform_2, window_bounds = array<i64: 32, 32>}, {transform_indices = @transform_3, window_bounds = array<i64: 32, 32>}, {transform_indices = @transform_4, window_bounds = array<i64: 3, 32>}, {transform_indices = @transform_5, window_bounds = array<i64: 16, 32>}, {transform_indices = @transform_6, window_bounds = array<i64: 16, 32>}, {transform_indices = @transform_7, window_bounds = array<i64: 16, 32>}]} {
    %c0 = arith.constant 0 : index
    %c0_0 = arith.constant 0 : index
    %0 = vector.load %arg2[%c0, %c0_0] : memref<16x32xf32, #tpu.memory_space<vmem>>, vector<16x32xf32>
    %c0_1 = arith.constant 0 : index
    %c0_2 = arith.constant 0 : index
    %1 = vector.load %arg3[%c0_1, %c0_2] : memref<32x32xf32, #tpu.memory_space<vmem>>, vector<32x32xf32>
    %cst = arith.constant dense<0.000000e+00> : vector<16x32xf32>
    %2 = tpu.matmul %0, %1, %cst {dimension_numbers = #tpu.dot_dimension_numbers<[1], [0], [0], [1], [0, 0, 1, 1], [], []>} : vector<16x32xf32>, vector<32x32xf32>, vector<16x32xf32> -> vector<16x32xf32>
    %c0_3 = arith.constant 0 : index
    %c0_4 = arith.constant 0 : index
    %3 = vector.load %arg6[%c0_3, %c0_4] : memref<3x32xf32, #tpu.memory_space<vmem>>, vector<1x32xf32>
    %4 = vector.broadcast %3 : vector<1x32xf32> to vector<16x32xf32>
    %5 = arith.addf %2, %4 : vector<16x32xf32>
    %c0_5 = arith.constant 0 : index
    %c0_6 = arith.constant 0 : index
    %6 = vector.load %arg7[%c0_5, %c0_6] : memref<16x32xf32, #tpu.memory_space<vmem>>, vector<16x32xf32>
    tpu.vector_store %arg7[%c0_5, %c0_6], %5 {strides = array<i32>} : memref<16x32xf32, #tpu.memory_space<vmem>>, vector<16x32xf32>,
    %c0_7 = arith.constant 0 : index
    %c0_8 = arith.constant 0 : index
    %7 = vector.load %arg4[%c0_7, %c0_8] : memref<32x32xf32, #tpu.memory_space<vmem>>, vector<32x32xf32>
    %cst_9 = arith.constant dense<0.000000e+00> : vector<16x32xf32>
    %8 = tpu.matmul %0, %7, %cst_9 {dimension_numbers = #tpu.dot_dimension_numbers<[1], [0], [0], [1], [0, 0, 1, 1], [], []>} : vector<16x32xf32>, vector<32x32xf32>, vector<16x32xf32> -> vector<16x32xf32>
    %c1 = arith.constant 1 : index
    %c0_10 = arith.constant 0 : index
    %9 = vector.load %arg6[%c1, %c0_10] : memref<3x32xf32, #tpu.memory_space<vmem>>, vector<1x32xf32>
    %10 = vector.broadcast %9 : vector<1x32xf32> to vector<16x32xf32>
    %11 = arith.addf %8, %10 : vector<16x32xf32>
    %c0_11 = arith.constant 0 : index
    %c0_12 = arith.constant 0 : index
    %12 = vector.load %arg8[%c0_11, %c0_12] : memref<16x32xf32, #tpu.memory_space<vmem>>, vector<16x32xf32>
    tpu.vector_store %arg8[%c0_11, %c0_12], %11 {strides = array<i32>} : memref<16x32xf32, #tpu.memory_space<vmem>>, vector<16x32xf32>,
    %c0_13 = arith.constant 0 : index
    %c0_14 = arith.constant 0 : index
    %13 = vector.load %arg5[%c0_13, %c0_14] : memref<32x32xf32, #tpu.memory_space<vmem>>, vector<32x32xf32>
    %cst_15 = arith.constant dense<0.000000e+00> : vector<16x32xf32>
    %14 = tpu.matmul %0, %13, %cst_15 {dimension_numbers = #tpu.dot_dimension_numbers<[1], [0], [0], [1], [0, 0, 1, 1], [], []>} : vector<16x32xf32>, vector<32x32xf32>, vector<16x32xf32> -> vector<16x32xf32>
    %c2 = arith.constant 2 : index
    %c0_16 = arith.constant 0 : index
    %15 = vector.load %arg6[%c2, %c0_16] : memref<3x32xf32, #tpu.memory_space<vmem>>, vector<1x32xf32>
    %16 = vector.broadcast %15 : vector<1x32xf32> to vector<16x32xf32>
    %17 = arith.addf %14, %16 : vector<16x32xf32>
    %c0_17 = arith.constant 0 : index
    %c0_18 = arith.constant 0 : index
    %18 = vector.load %arg9[%c0_17, %c0_18] : memref<16x32xf32, #tpu.memory_space<vmem>>, vector<16x32xf32>
    tpu.vector_store %arg9[%c0_17, %c0_18], %17 {strides = array<i32>} : memref<16x32xf32, #tpu.memory_space<vmem>>, vector<16x32xf32>,
    return
  }
  func.func @transform_0(%arg0: i32, %arg1: i32) -> (i32, i32) {
    %c0_i32 = arith.constant 0 : i32
    %c0_i32_0 = arith.constant 0 : i32
    return %arg1, %c0_i32 : i32, i32
  }
  func.func @transform_1(%arg0: i32, %arg1: i32) -> (i32, i32) {
    %c0_i32 = arith.constant 0 : i32
    %c0_i32_0 = arith.constant 0 : i32
    return %c0_i32, %arg0 : i32, i32
  }
  func.func @transform_2(%arg0: i32, %arg1: i32) -> (i32, i32) {
    %c0_i32 = arith.constant 0 : i32
    %c0_i32_0 = arith.constant 0 : i32
    return %c0_i32, %arg0 : i32, i32
  }
  func.func @transform_3(%arg0: i32, %arg1: i32) -> (i32, i32) {
    %c0_i32 = arith.constant 0 : i32
    %c0_i32_0 = arith.constant 0 : i32
    return %c0_i32, %arg0 : i32, i32
  }
  func.func @transform_4(%arg0: i32, %arg1: i32) -> (i32, i32) {
    %c0_i32 = arith.constant 0 : i32
    %c0_i32_0 = arith.constant 0 : i32
    return %c0_i32, %arg0 : i32, i32
  }
  func.func @transform_5(%arg0: i32, %arg1: i32) -> (i32, i32) {
    %c0_i32 = arith.constant 0 : i32
    return %arg1, %arg0 : i32, i32
  }
  func.func @transform_6(%arg0: i32, %arg1: i32) -> (i32, i32) {
    %c0_i32 = arith.constant 0 : i32
    return %arg1, %arg0 : i32, i32
  }
  func.func @transform_7(%arg0: i32, %arg1: i32) -> (i32, i32) {
    %c0_i32 = arith.constant 0 : i32
    return %arg1, %arg0 : i32, i32
  }
}

</mosaic_0001>

<bundles_post_ra>
// kernel: tpu_custom_call.1
= control target key start
LH: loop header
LB: loop body
LE: loop exit
PB: predicated region body
PF: predicated region fallthrough
CT: control target
= control target key end

     0   :  { %13 = vsyncpa [#allocation3], 0  ;;  %s888_s0 = inlined_call_operand.hbm [shape: f32[16,32], index: 0, kind: input, shape index: {}]   ;;  %s889_s1 = inlined_call_operand.hbm [shape: f32[32,32], index: 1, kind: input, shape index: {}]   ;;  %s890_s2 = inlined_call_operand.hbm [shape: f32[32,32], index: 2, kind: input, shape index: {}]   ;;  %s891_s3 = inlined_call_operand.hbm [shape: f32[32,32], index: 3, kind: input, shape index: {}]   ;;  %s892_s4 = inlined_call_operand.hbm [shape: f32[3,32], index: 4, kind: input, shape index: {}]   ;;  %s893_s5 = inlined_call_operand.hbm [shape: f32[16,32], index: 5, kind: output, shape index: {0}]   ;;  %s894_s6 = inlined_call_operand.hbm [shape: f32[16,32], index: 6, kind: output, shape index: {1}]   ;;  %s895_s7 = inlined_call_operand.hbm [shape: f32[16,32], index: 7, kind: output, shape index: {2}]  }
   0x1   :  { %14 = vsyncpa [#allocation6], 0 }
   0x2   :  { %15 = vsyncpa [#allocation9], 0 }
   0x3   :  { %16 = vsyncpa [#allocation4], 0 }
   0x4   :  { %17 = vsyncpa [#allocation13], 0  ;;  %s688_s24 = smov [#allocation5]   ;;  %s689_s26 = smov [#allocation8]  }
   0x5   :  { %s35_s25 = sshll.u32 %s688_s24, 4  ;;  %s59_s27 = sshll.u32 %s689_s26, 4  ;;  %s36_s25 = int_to_ptr.vmem [resolvable:$true] %s35_s25  ;;  %s738_s27 = int_to_ptr.vmem [resolvable:$true] %s59_s27 }
   0x6   :  { %s502_s30 = scalar_lea.hbm %s889_s1, 512 }
   0x7   :  { %p503_p0 = scmp.ne.s32.totalorder %s889_s1, %s502_s30  ;;  %p506_p1 = scmp.lt.u32.totalorder %s502_s30, %s889_s1 }
   0x9   :  { %p508_p2 = pnand %p506_p1, %p503_p0 }
   0xb   :  { %511 = shalt.err (!%p508_p2)
}
   0xc   :  { %s512_s12 = scalar_lea.vmem %s36_s25, 512  ;;  %p517_p4 = scmp.lt.s32.totalorder %s36_s25, %s36_s25 }
   0xd   :  { %p513_p3 = scmp.ne.s32.totalorder %s36_s25, %s512_s12  ;;  %p518_p5 = scmp.lt.s32.totalorder %s512_s12, %s512_s12 }
   0xf   :  { %p519_p6 = por %p518_p5, %p517_p4 }
  0x11   :  { %p520_p7 = pnand %p519_p6, %p513_p3 }
  0x13   :  { %523 = shalt.err (!%p520_p7)
}
  0x14   :  { %s690_s13 = smov 128   ;;  %s691_s14 = smov 8  }
  0x15   :  { %41 = dma.hbm_to_vmem [thread:$0]  %s889_s1, 512, %s36_s25, [#allocation6], %s690_s13, %s690_s13, %s691_s14  }
  0x16   :  { %s524_s19 = scalar_lea.hbm %s891_s3, 512 }
  0x17   :  { %p525_p8 = scmp.ne.s32.totalorder %s891_s3, %s524_s19  ;;  %p528_p9 = scmp.lt.u32.totalorder %s524_s19, %s891_s3 }
  0x19   :  { %p530_p10 = pnand %p528_p9, %p525_p8 }
  0x1b   :  { %533 = shalt.err (!%p530_p10)
}
  0x1c   :  { %s534_s24 = scalar_lea.vmem %s738_s27, 512  ;;  %p539_p12 = scmp.lt.s32.totalorder %s738_s27, %s738_s27 }
  0x1d   :  { %p535_p11 = scmp.ne.s32.totalorder %s738_s27, %s534_s24  ;;  %p540_p13 = scmp.lt.s32.totalorder %s534_s24, %s534_s24 }
  0x1f   :  { %p541_p0 = por %p540_p13, %p539_p12 }
  0x21   :  { %p542_p1 = pnand %p541_p0, %p535_p11 }
  0x23   :  { %545 = shalt.err (!%p542_p1)
}
  0x24   :  { %65 = dma.hbm_to_vmem [thread:$0]  %s891_s3, 512, %s738_s27, [#allocation9], %s690_s13, %s690_s13, %s691_s14  }
  0x25   :  { %s692_s26 = smov [#allocation2]   ;;  %s693_s29 = smov [#allocation7]  }
  0x26   :  { %s23_s28 = sshll.u32 %s692_s26, 4  ;;  %s47_s30 = sshll.u32 %s693_s29, 4  ;;  %s24_s28 = int_to_ptr.vmem [resolvable:$true] %s23_s28  ;;  %s775_s30 = int_to_ptr.vmem [resolvable:$true] %s47_s30 }
  0x27   :  { %s546_s10 = scalar_lea.hbm %s888_s0, 256 }
  0x28   :  { %p547_p2 = scmp.ne.s32.totalorder %s888_s0, %s546_s10  ;;  %p550_p3 = scmp.lt.u32.totalorder %s546_s10, %s888_s0 }
  0x2a   :  { %p552_p4 = pnand %p550_p3, %p547_p2 }
  0x2c   :  { %555 = shalt.err (!%p552_p4)
}
  0x2d   :  { %s556_s3 = scalar_lea.vmem %s24_s28, 256  ;;  %p561_p6 = scmp.lt.s32.totalorder %s24_s28, %s24_s28 }
  0x2e   :  { %p557_p5 = scmp.ne.s32.totalorder %s24_s28, %s556_s3  ;;  %p562_p7 = scmp.lt.s32.totalorder %s556_s3, %s556_s3 }
  0x30   :  { %p563_p8 = por %p562_p7, %p561_p6 }
  0x32   :  { %p564_p9 = pnand %p563_p8, %p557_p5 }
  0x34   :  { %567 = shalt.err (!%p564_p9)
}
  0x35   :  { %29 = dma.hbm_to_vmem [thread:$0]  %s888_s0, 256, %s24_s28, [#allocation3], %s690_s13, %s690_s13, %s691_s14  }
  0x36   :  { %s568_s20 = scalar_lea.hbm %s890_s2, 512 }
  0x37   :  { %p569_p10 = scmp.ne.s32.totalorder %s890_s2, %s568_s20  ;;  %p572_p11 = scmp.lt.u32.totalorder %s568_s20, %s890_s2 }
  0x39   :  { %p574_p12 = pnand %p572_p11, %p569_p10 }
  0x3b   :  { %577 = shalt.err (!%p574_p12)
}
  0x3c   :  { %s578_s1 = scalar_lea.vmem %s775_s30, 512  ;;  %p583_p0 = scmp.lt.s32.totalorder %s775_s30, %s775_s30 }
  0x3d   :  { %p579_p13 = scmp.ne.s32.totalorder %s775_s30, %s578_s1  ;;  %p584_p1 = scmp.lt.s32.totalorder %s578_s1, %s578_s1 }
  0x3f   :  { %p585_p2 = por %p584_p1, %p583_p0 }
  0x41   :  { %p586_p3 = pnand %p585_p2, %p579_p13 }
  0x43   :  { %589 = shalt.err (!%p586_p3)
}
  0x44   :  { %53 = dma.hbm_to_vmem [thread:$0]  %s890_s2, 512, %s775_s30, [#allocation6], %s690_s13, %s690_s13, %s691_s14  }
  0x45   :  { %s694_s26 = smov [#allocation10]   ;;  %s590_s9 = scalar_lea.hbm %s892_s4, 64 }
  0x46   :  { %s72_s28 = sshll.u32 %s694_s26, 4  ;;  %p591_p4 = scmp.ne.s32.totalorder %s892_s4, %s590_s9  ;;  %s73_s28 = int_to_ptr.vmem [resolvable:$true] %s72_s28 }
  0x47   :  { %p594_p5 = scmp.lt.u32.totalorder %s590_s9, %s892_s4 }
  0x49   :  { %p596_p6 = pnand %p594_p5, %p591_p4 }
  0x4b   :  { %599 = shalt.err (!%p596_p6)
}
  0x4c   :  { %s600_s16 = scalar_lea.vmem %s73_s28, 64  ;;  %p605_p8 = scmp.lt.s32.totalorder %s73_s28, %s73_s28 }
  0x4d   :  { %p601_p7 = scmp.ne.s32.totalorder %s73_s28, %s600_s16  ;;  %p606_p9 = scmp.lt.s32.totalorder %s600_s16, %s600_s16 }
  0x4f   :  { %p607_p10 = por %p606_p9, %p605_p8 }
  0x51   :  { %p608_p11 = pnand %p607_p10, %p601_p7 }
  0x53   :  { %611 = shalt.err (!%p608_p11)
}
  0x54   :  { %75 = dma.hbm_to_vmem [thread:$0]  %s892_s4, 64, %s73_s28, [#allocation9]  }
  0x55   :  { %678 = dma.done.wait [#allocation3], 256  }
  0x56   :  { %679 = vsyncadd [#allocation3], 4294967040 }
  0x57   :  { %680 = dma.done.wait [#allocation6], 1024  }
  0x58   :  { %681 = vsyncadd [#allocation6], 4294966272 }
  0x59   :  { %682 = dma.done.wait [#allocation9], 576  }
  0x5a   :  { %683 = vsyncadd [#allocation9], 4294966720  ;;  %v93_v0 = vld [vmem:[#allocation5] sm:$0xff]  ;;  %v94_v1 = vld [vmem:[#allocation5 + $0x8] sm:$0xff]  ;;  %vm102_vm0 = vcmask 261120   ;;  %s695_s4 = smov [#allocation11]  }
  0x5b   :  { %v95_v2 = vld [vmem:[#allocation5 + $0x10] sm:$0xff]  ;;  %v468_v3 = vpack.c.bf16 %v94_v1, %v93_v0  ;;  %v96_v4 = vld [vmem:[#allocation5 + $0x18] sm:$0xff]  ;;  %v186_v5 = vld [vmem:[#allocation7] sm:$0xff]  ;;  %s363_s3 = sshll.u32 %s695_s4, 4  ;;  %s696_s27 = smov [#allocation12]   ;;  %s364_s3 = int_to_ptr.vmem [resolvable:$true] %s363_s3 }
  0x5c   :  { %v187_v6 = vld [vmem:[#allocation7 + $0x8] sm:$0xff]  ;;  %v472_v7 = vpack.c.bf16 %v96_v4, %v95_v2  ;;  %v91_v9 = vld [vmem:[#allocation2] sm:$0xff]  ;;  %v272_v10 = vld [vmem:[#allocation8] sm:$0xff]  ;;  %s375_s17 = sshll.u32 %s696_s27, 4  ;;  %s612_s18 = scalar_lea.vmem %s364_s3, 256  ;;  %s831_s17 = int_to_ptr.vmem [resolvable:$true] %s375_s17 }
  0x5d   :  { %v476_v8 = vpack.c.bf16 %v187_v6, %v186_v5  ;;  %469 = vmatprep.subr.bf16.mxu0 %v468_v3  ;;  %443 = vmatprep.mubr.msk.f32.mxu0 %vm102_vm0, %v91_v9  ;;  %v273_v11 = vld [vmem:[#allocation8 + $0x8] sm:$0xff]  ;;  %v188_v12 = vld [vmem:[#allocation7 + $0x10] sm:$0xff]  ;;  %v189_v13 = vld [vmem:[#allocation7 + $0x18] sm:$0xff]  ;;  %p613_p12 = scmp.ne.s32.totalorder %s364_s3, %s612_s18  ;;  %p617_p13 = scmp.lt.s32.totalorder %s364_s3, %s364_s3 }
  0x5e   :  { %471 = vmatpush3.bf16.msra.mxu0 %v468_v3  ;;  %v480_v14 = vpack.c.bf16 %v189_v13, %v188_v12  ;;  %v484_v15 = vpack.c.bf16 %v273_v11, %v272_v10  ;;  %v274_v16 = vld [vmem:[#allocation8 + $0x10] sm:$0xff]  ;;  %v275_v17 = vld [vmem:[#allocation8 + $0x18] sm:$0xff]  ;;  %454 = vmatprep.mubr.msk.f32.mxu1 %vm102_vm0, %v91_v9  ;;  %v408_v20 = vld [vmem:[#allocation10] ss:$0 sm:$0xff]  ;;  %p618_p0 = scmp.lt.s32.totalorder %s612_s18, %s612_s18 }
  0x5f   :  { %477 = vmatprep.subr.bf16.mxu1 %v476_v8  ;;  %473 = vmatprep.subr.bf16.mxu0 %v472_v7  ;;  %v92_v18 = vld [vmem:[#allocation2 + $0x8] sm:$0xff]  ;;  %v488_v19 = vpack.c.bf16 %v275_v17, %v274_v16  ;;  %v411_v21 = vld [vmem:[#allocation10 + $0x1] ss:$0 sm:$0xff] }
  0x60   :  { %479 = vmatpush3.bf16.msra.mxu1 %v476_v8  ;;  %p619_p1 = por %p618_p0, %p617_p13 }
  0x61   :  { %481 = vmatprep.subr.bf16.mxu1 %v480_v14 }
  0x62   :  { %475 = vmatpush3.bf16.msra.mxu0 %v472_v7  ;;  %p620_p2 = pnand %p619_p1, %p613_p12 }
  0x63   :  { %485 = vmatprep.subr.bf16.mxu0 %v484_v15 }
  0x64   :  { %483 = vmatpush3.bf16.msra.mxu1 %v480_v14 }
  0x65   :  { %444 = vmatmul.mubr.msk.f32.vlgmr.msra.gmra.mrb[0].mxu0 %vm102_vm0, %v92_v18 }
  0x66   :  { %487 = vmatpush3.bf16.msra.mxu0 %v484_v15  ;;  %465 = vmatprep.mubr.msk.f32.mxu0 %vm102_vm0, %v91_v9 }
  0x67   :  { %455 = vmatmul.mubr.msk.f32.vlgmr.msra.gmra.mrb[0].mxu1 %vm102_vm0, %v92_v18  ;;  %489 = vmatprep.subr.bf16.mxu0 %v488_v19 }
  0x6a   :  { %491 = vmatpush3.bf16.msra.mxu0 %v488_v19 }
  0x6d   :  { %466 = vmatmul.mubr.msk.f32.vlgmr.msra.gmra.mrb[2].mxu0 %vm102_vm0, %v92_v18 }
 0x138   :  { %v445_v22 = vpop.f32.mrb[0].mxu0 }
 0x139   :  { %v181_v23 = vadd.f32 %v445_v22, %v408_v20  ;;  %v175_v24 = vpop.f32.mrb[1].mxu0 }
 0x13a   :  { %v456_v25 = vpop.f32.mrb[0].mxu1  ;;  %v176_v26 = vadd.f32 %v408_v20, %v175_v24 }
 0x13b   :  { %v267_v27 = vadd.f32 %v456_v25, %v411_v21  ;;  %v261_v28 = vpop.f32.mrb[1].mxu1  ;;  %185 = vst.msk [vmem:[#allocation11 + $0x8] sm:$0xff] %vm102_vm0, %v181_v23 }
 0x13c   :  { %v262_v29 = vadd.f32 %v411_v21, %v261_v28  ;;  %184 = vst.msk [vmem:[#allocation11] sm:$0xff] %vm102_vm0, %v176_v26 }
 0x13d   :  { %271 = vst.msk [vmem:[#allocation12 + $0x8] sm:$0xff] %vm102_vm0, %v267_v27 }
 0x13e   :  { %270 = vst.msk [vmem:[#allocation12] sm:$0xff] %vm102_vm0, %v262_v29 }
 0x13f   :  { %623 = shalt.err (!%p620_p2)
}
 0x140   :  { %s624_s21 = scalar_lea.hbm %s893_s5, 256 }
 0x141   :  { %p625_p3 = scmp.ne.s32.totalorder %s893_s5, %s624_s21  ;;  %p628_p4 = scmp.lt.u32.totalorder %s624_s21, %s893_s5 }
 0x143   :  { %p630_p5 = pnand %p628_p4, %p625_p3 }
 0x145   :  { %633 = shalt.err (!%p630_p5)
}
 0x146   :  { %369 = dma.vmem_to_hbm [thread:$0]  %s364_s3, 256, %s893_s5, [#allocation4], %s690_s13, %s690_s13, %s691_s14   ;;  %v414_v30 = vld [vmem:[#allocation10 + $0x2] ss:$0 sm:$0xff] }
 0x147   :  { %s634_s26 = scalar_lea.vmem %s831_s17, 256  ;;  %p639_p7 = scmp.lt.s32.totalorder %s831_s17, %s831_s17 }
 0x148   :  { %p635_p6 = scmp.ne.s32.totalorder %s831_s17, %s634_s26  ;;  %p640_p8 = scmp.lt.s32.totalorder %s634_s26, %s634_s26 }
 0x14a   :  { %p641_p9 = por %p640_p8, %p639_p7 }
 0x14c   :  { %p642_p10 = pnand %p641_p9, %p635_p6 }
 0x14e   :  { %645 = shalt.err (!%p642_p10)
}
 0x14f   :  { %s646_s8 = scalar_lea.hbm %s894_s6, 256 }
 0x150   :  { %p647_p11 = scmp.ne.s32.totalorder %s894_s6, %s646_s8  ;;  %p650_p12 = scmp.lt.u32.totalorder %s646_s8, %s894_s6 }
 0x152   :  { %p652_p13 = pnand %p650_p12, %p647_p11 }
 0x154   :  { %655 = shalt.err (!%p652_p13)
}
 0x155   :  { %381 = dma.vmem_to_hbm [thread:$0]  %s831_s17, 256, %s894_s6, [#allocation13], %s690_s13, %s690_s13, %s691_s14   ;;  %v467_v31 = vpop.f32.mrb[2].mxu0 }
 0x156   :  { %s697_s16 = smov [#allocation14]   ;;  %v353_v32 = vadd.f32 %v467_v31, %v414_v30  ;;  %v347_v33 = vpop.f32.mrb[3].mxu0 }
 0x157   :  { %s387_s2 = sshll.u32 %s697_s16, 4  ;;  %v348_v34 = vadd.f32 %v414_v30, %v347_v33  ;;  %s388_s2 = int_to_ptr.vmem [resolvable:$true] %s387_s2 }
 0x158   :  { %357 = vst.msk [vmem:[#allocation14 + $0x8] sm:$0xff] %vm102_vm0, %v353_v32  ;;  %s656_s30 = scalar_lea.vmem %s388_s2, 256  ;;  %p661_p1 = scmp.lt.s32.totalorder %s388_s2, %s388_s2 }
 0x159   :  { %356 = vst.msk [vmem:[#allocation14] sm:$0xff] %vm102_vm0, %v348_v34  ;;  %p657_p0 = scmp.ne.s32.totalorder %s388_s2, %s656_s30  ;;  %p662_p2 = scmp.lt.s32.totalorder %s656_s30, %s656_s30 }
 0x15b   :  { %p663_p3 = por %p662_p2, %p661_p1 }
 0x15d   :  { %p664_p4 = pnand %p663_p3, %p657_p0 }
 0x15f   :  { %667 = shalt.err (!%p664_p4)
}
 0x160   :  { %s668_s3 = scalar_lea.hbm %s895_s7, 256 }
 0x161   :  { %p669_p5 = scmp.ne.s32.totalorder %s895_s7, %s668_s3  ;;  %p672_p6 = scmp.lt.u32.totalorder %s668_s3, %s895_s7 }
 0x163   :  { %p674_p7 = pnand %p672_p6, %p669_p5 }
 0x165   :  { %677 = shalt.err (!%p674_p7)
}
 0x166   :  { %393 = dma.vmem_to_hbm [thread:$0]  %s388_s2, 256, %s895_s7, [#allocation13], %s690_s13, %s690_s13, %s691_s14  }
 0x167   :  { %684 = dma.done.wait [#allocation4], 256  }
 0x168   :  { %685 = vsyncadd [#allocation4], 4294967040 }
 0x169   :  { %686 = dma.done.wait [#allocation13], 512  }
 0x16a   :  { %687 = vsyncadd [#allocation13], 4294966784 }
 0x16b   :  { %403 = vsyncpa [#allocation3], 1 }
 0x16c   :  { %404 = vsyncpa [#allocation6], 1 }
 0x16d   :  { %405 = vsyncpa [#allocation9], 1 }
 0x16e   :  { %406 = vsyncpa [#allocation4], 1 }
 0x16f   :  { %407 = vsyncpa [#allocation13], 1 }

</bundles_post_ra>
